<compile_context>
chip_gen: v6e
topology: v6e:2x2x1
jax: 0.10.0
libtpu: 0.0.40
codegen_flags: <defaults>
</compile_context>

<pallas_src>
import numpy as np
import jax
import jax.numpy as jnp
from jax.experimental import pallas as pl
from jax.experimental.pallas import tpu as pltpu


def io_b_voter_kernel(x_ref, ender_ref, adj_ref,
                      w_n2e_x_ref, w_n2e_e_ref, b_n2e_ref,
                      w_e2e_ref, b_e2e_ref,
                      w_e2n_ref, b_e2n_ref,
                      w_n2n_ref, b_n2n_ref,
                      w_out_s_ref, w_out_h_ref, b_out_ref,
                      out_ref, acc_ref, ender_proj_ref):
    k = pl.program_id(0)

    # init accumulator + hoist grid-invariant anchor projection on first tile
    @pl.when(k == 0)
    def _():
        acc_ref[...] = jnp.zeros_like(acc_ref)
        ender_proj_ref[...] = (
            jnp.dot(ender_ref[...], w_n2e_e_ref[...],
                    preferred_element_type=jnp.float32)
            + b_n2e_ref[...])                               # (B, H)

    B, TN, D = x_ref.shape
    H = acc_ref.shape[-1]

    # relu(n2e(cat(x, ender)))  ==  relu(x @ Wx + (ender @ We + b))
    # flatten batch*node so the MXU sees one dense (B*TN, D) x (D, H) matmul
    x2 = x_ref[...].reshape(B * TN, D)
    h = jnp.dot(x2, w_n2e_x_ref[...], preferred_element_type=jnp.float32)
    h = h.reshape(B, TN, H) + ender_proj_ref[...][:, None, :]
    h = jnp.maximum(h, 0.0)

    # relu(e2e(h)) as a flat (B*TN, H) x (H, H) matmul
    h = jnp.dot(h.reshape(B * TN, H), w_e2e_ref[...],
                preferred_element_type=jnp.float32) + b_e2e_ref[...]
    h = jnp.maximum(h, 0.0).reshape(B, TN, H)

    # scale per node by adj column, reduce over nodes (padding rows have adj=0)
    adj = adj_ref[...]                                      # (TN, 1)
    acc_ref[...] += jnp.sum(h * adj[None, :, :], axis=1)    # (B, H)

    # tail: run once after the last node tile
    @pl.when(k == pl.num_programs(0) - 1)
    def _():
        t = acc_ref[...]                                    # (B, H)
        t = jnp.maximum(jnp.dot(t, w_e2n_ref[...],
                                preferred_element_type=jnp.float32)
                        + b_e2n_ref[...], 0.0)
        t = jnp.maximum(jnp.dot(t, w_n2n_ref[...],
                                preferred_element_type=jnp.float32)
                        + b_n2n_ref[...], 0.0)
        starter = ender_ref[...]                            # starter == x[:, i, :]
        # output(cat(starter, t)) == starter @ Ws + t @ Wh + b
        logits = (jnp.dot(starter, w_out_s_ref[...],
                          preferred_element_type=jnp.float32)
                  + jnp.dot(t, w_out_h_ref[...],
                            preferred_element_type=jnp.float32)
                  + b_out_ref[...])                         # (B, D)
        # log_softmax over dim=1
        m = jnp.max(logits, axis=1, keepdims=True)
        lse = jnp.log(jnp.sum(jnp.exp(logits - m), axis=1, keepdims=True)) + m
        out_ref[...] = logits - lse


def io_b_voter_pallas(x, adj_col, i, num, node_size, params, tile_n_cap=1024):
    del num, node_size  # chunking is an exact partition of the node axis
    B, N, D = x.shape
    H = params['w_e2e'].shape[0]

    # glue: gather the anchor node, pick the node tile size.
    # small graphs -> single grid step (whole node axis, rounded up to 8);
    # large graphs -> 1024-row tiles (multiple of 8 keeps reshape layout-safe).
    ender = x[:, i, :]                                      # (B, D)
    if N <= tile_n_cap:
        tile_n = max(8, ((N + 7) // 8) * 8)
        n_pad = tile_n
    else:
        tile_n = tile_n_cap
        n_pad = ((N + tile_n - 1) // tile_n) * tile_n
    x_p = jnp.pad(x, ((0, 0), (0, n_pad - N), (0, 0)))
    adj_p = jnp.pad(adj_col, (0, n_pad - N)).reshape(n_pad, 1)

    w_n2e_x = params['w_n2e'][:D, :]
    w_n2e_e = params['w_n2e'][D:, :]
    w_out_s = params['w_out'][:D, :]
    w_out_h = params['w_out'][D:, :]
    b_n2e = params['b_n2e'].reshape(1, H)
    b_e2e = params['b_e2e'].reshape(1, H)
    b_e2n = params['b_e2n'].reshape(1, H)
    b_n2n = params['b_n2n'].reshape(1, H)
    b_out = params['b_out'].reshape(1, D)

    def full_spec(a):
        nd = a.ndim
        return pl.BlockSpec(a.shape, lambda k, _nd=nd: (0,) * _nd)

    grid = (n_pad // tile_n,)
    in_specs = [
        pl.BlockSpec((B, tile_n, D), lambda k: (0, k, 0)),   # x tile
        full_spec(ender),                                    # ender / starter
        pl.BlockSpec((tile_n, 1), lambda k: (k, 0)),         # adj tile
        full_spec(w_n2e_x), full_spec(w_n2e_e), full_spec(b_n2e),
        full_spec(params['w_e2e']), full_spec(b_e2e),
        full_spec(params['w_e2n']), full_spec(b_e2n),
        full_spec(params['w_n2n']), full_spec(b_n2n),
        full_spec(w_out_s), full_spec(w_out_h), full_spec(b_out),
    ]

    return pl.pallas_call(
        io_b_voter_kernel,
        out_shape=jax.ShapeDtypeStruct((B, D), jnp.float32),
        grid_spec=pltpu.PrefetchScalarGridSpec(
            num_scalar_prefetch=0,
            grid=grid,
            in_specs=in_specs,
            out_specs=pl.BlockSpec((B, D), lambda k: (0, 0)),
            scratch_shapes=[pltpu.VMEM((B, H), jnp.float32),    # accumulator
                            pltpu.VMEM((B, H), jnp.float32)],   # hoisted ender proj
        ),
        compiler_params=pltpu.CompilerParams(
            dimension_semantics=("arbitrary",)),
    )(x_p, ender, adj_p,
      w_n2e_x, w_n2e_e, b_n2e,
      params['w_e2e'], b_e2e,
      params['w_e2n'], b_e2n,
      params['w_n2n'], b_n2n,
      w_out_s, w_out_h, b_out)


def io_b_voter_ref(x, adj_col, i, num, node_size, params):
    """Pure-JAX port of the PyTorch forward (chunk loop kept verbatim)."""
    def lin(v, w, b):
        return v @ w + b
    starter = x[:, i, :]
    total = 0.0
    for n in range(num + 1):
        if n != num:
            cx = x[:, n * node_size:(n + 1) * node_size, :]
            ca = adj_col[n * node_size:(n + 1) * node_size]
        else:
            cx = x[:, n * node_size:, :]
            ca = adj_col[n * node_size:]
        ender = jnp.broadcast_to(x[:, i, :][:, None, :], cx.shape)
        c = jnp.concatenate([cx, ender], axis=2)
        c = jax.nn.relu(lin(c, params['w_n2e'], params['b_n2e']))
        c = jax.nn.relu(lin(c, params['w_e2e'], params['b_e2e']))
        c = c * ca[None, :, None]
        total = total + jnp.sum(c, axis=1)
    t = jax.nn.relu(lin(total, params['w_e2n'], params['b_e2n']))
    t = jax.nn.relu(lin(t, params['w_n2n'], params['b_n2n']))
    cat = jnp.concatenate([starter, t], axis=-1)
    out = lin(cat, params['w_out'], params['b_out'])
    return jax.nn.log_softmax(out, axis=1)


if __name__ == "__main__":
    B, N, D, H = 2, 12, 4, 32          # batch, nodes, dim, hid
    node_size, num = 5, 2              # chunks [0:5], [5:10], [10:12]
    i = 3                              # anchor node index

    key = jax.random.PRNGKey(0)
    keys = jax.random.split(key, 12)

    def lin_init(kw, kb, fan_in, fan_out):
        bound = 1.0 / np.sqrt(fan_in)
        w = jax.random.uniform(kw, (fan_in, fan_out), jnp.float32, -bound, bound)
        b = jax.random.uniform(kb, (fan_out,), jnp.float32, -bound, bound)
        return w, b

    params = {}
    params['w_n2e'], params['b_n2e'] = lin_init(keys[0], keys[1], 2 * D, H)
    params['w_e2e'], params['b_e2e'] = lin_init(keys[2], keys[3], H, H)
    params['w_e2n'], params['b_e2n'] = lin_init(keys[4], keys[5], H, H)
    params['w_n2n'], params['b_n2n'] = lin_init(keys[6], keys[7], H, H)
    params['w_out'], params['b_out'] = lin_init(keys[8], keys[9], D + H, D)

    x = jax.random.normal(keys[10], (B, N, D), jnp.float32)
    adj_col = (jax.random.uniform(keys[11], (N,)) > 0.5).astype(jnp.float32)

    out = io_b_voter_pallas(x, adj_col, i, num, node_size, params)
    out = jax.block_until_ready(out)

    ref = io_b_voter_ref(x, adj_col, i, num, node_size, params)
    np.testing.assert_allclose(np.asarray(out), np.asarray(ref),
                               rtol=1e-5, atol=1e-5)
    print("KERNEL_OK")
</pallas_src>

<mosaic_0001>
module attributes {stable_mosaic.version = 11 : i64} {
  func.func @io_b_voter_kernel(%arg0: i32, %arg1: memref<2x16x4xf32, #tpu.memory_space<vmem>>, %arg2: memref<2x4xf32, #tpu.memory_space<vmem>>, %arg3: memref<16x1xf32, #tpu.memory_space<vmem>>, %arg4: memref<4x32xf32, #tpu.memory_space<vmem>>, %arg5: memref<4x32xf32, #tpu.memory_space<vmem>>, %arg6: memref<1x32xf32, #tpu.memory_space<vmem>>, %arg7: memref<32x32xf32, #tpu.memory_space<vmem>>, %arg8: memref<1x32xf32, #tpu.memory_space<vmem>>, %arg9: memref<32x32xf32, #tpu.memory_space<vmem>>, %arg10: memref<1x32xf32, #tpu.memory_space<vmem>>, %arg11: memref<32x32xf32, #tpu.memory_space<vmem>>, %arg12: memref<1x32xf32, #tpu.memory_space<vmem>>, %arg13: memref<4x4xf32, #tpu.memory_space<vmem>>, %arg14: memref<32x4xf32, #tpu.memory_space<vmem>>, %arg15: memref<1x4xf32, #tpu.memory_space<vmem>>, %arg16: memref<2x4xf32, #tpu.memory_space<vmem>>, %arg17: memref<2x32xf32, #tpu.memory_space<vmem>>, %arg18: memref<2x32xf32, #tpu.memory_space<vmem>>) attributes {dimension_semantics = [#tpu.dimension_semantics<arbitrary>], iteration_bounds = array<i64: 1>, scalar_prefetch = 0 : i64, scratch_operands = 2 : i64, tpu.core_type = #tpu.core_type<tc>, window_params = [{transform_indices = @transform_0, window_bounds = array<i64: 2, 16, 4>}, {pipeline_mode = #tpu.pipeline_mode<synchronous>, transform_indices = @transform_1, window_bounds = array<i64: 2, 4>}, {transform_indices = @transform_2, window_bounds = array<i64: 16, 1>}, {pipeline_mode = #tpu.pipeline_mode<synchronous>, transform_indices = @transform_3, window_bounds = array<i64: 4, 32>}, {pipeline_mode = #tpu.pipeline_mode<synchronous>, transform_indices = @transform_4, window_bounds = array<i64: 4, 32>}, {pipeline_mode = #tpu.pipeline_mode<synchronous>, transform_indices = @transform_5, window_bounds = array<i64: 1, 32>}, {pipeline_mode = #tpu.pipeline_mode<synchronous>, transform_indices = @transform_6, window_bounds = array<i64: 32, 32>}, {pipeline_mode = #tpu.pipeline_mode<synchronous>, transform_indices = @transform_7, window_bounds = array<i64: 1, 32>}, {pipeline_mode = #tpu.pipeline_mode<synchronous>, transform_indices = @transform_8, window_bounds = array<i64: 32, 32>}, {pipeline_mode = #tpu.pipeline_mode<synchronous>, transform_indices = @transform_9, window_bounds = array<i64: 1, 32>}, {pipeline_mode = #tpu.pipeline_mode<synchronous>, transform_indices = @transform_10, window_bounds = array<i64: 32, 32>}, {pipeline_mode = #tpu.pipeline_mode<synchronous>, transform_indices = @transform_11, window_bounds = array<i64: 1, 32>}, {pipeline_mode = #tpu.pipeline_mode<synchronous>, transform_indices = @transform_12, window_bounds = array<i64: 4, 4>}, {pipeline_mode = #tpu.pipeline_mode<synchronous>, transform_indices = @transform_13, window_bounds = array<i64: 32, 4>}, {pipeline_mode = #tpu.pipeline_mode<synchronous>, transform_indices = @transform_14, window_bounds = array<i64: 1, 4>}, {pipeline_mode = #tpu.pipeline_mode<synchronous>, transform_indices = @transform_15, window_bounds = array<i64: 2, 4>}]} {
    %c0_i32 = arith.constant 0 : i32
    %0 = arith.cmpi eq, %arg0, %c0_i32 : i32
    %1 = arith.extui %0 : i1 to i32
    %c0_i32_0 = arith.constant 0 : i32
    %2 = arith.cmpi ne, %1, %c0_i32_0 : i32
    scf.if %2 {
      %cst_23 = arith.constant 0.000000e+00 : f32
      %34 = vector.broadcast %cst_23 : f32 to vector<2x32xf32>
      %c0_24 = arith.constant 0 : index
      %c0_25 = arith.constant 0 : index
      %35 = vector.load %arg17[%c0_24, %c0_25] : memref<2x32xf32, #tpu.memory_space<vmem>>, vector<2x32xf32>
      tpu.vector_store %arg17[%c0_24, %c0_25], %34 {strides = array<i32>} : memref<2x32xf32, #tpu.memory_space<vmem>>, vector<2x32xf32>,
      %c0_26 = arith.constant 0 : index
      %c0_27 = arith.constant 0 : index
      %36 = vector.load %arg2[%c0_26, %c0_27] : memref<2x4xf32, #tpu.memory_space<vmem>>, vector<2x4xf32>
      %c0_28 = arith.constant 0 : index
      %c0_29 = arith.constant 0 : index
      %37 = vector.load %arg5[%c0_28, %c0_29] : memref<4x32xf32, #tpu.memory_space<vmem>>, vector<4x32xf32>
      %cst_30 = arith.constant dense<0.000000e+00> : vector<2x32xf32>
      %38 = tpu.matmul %36, %37, %cst_30 {dimension_numbers = #tpu.dot_dimension_numbers<[1], [0], [0], [1], [0, 0, 1, 1], [], []>} : vector<2x4xf32>, vector<4x32xf32>, vector<2x32xf32> -> vector<2x32xf32>
      %c0_31 = arith.constant 0 : index
      %c0_32 = arith.constant 0 : index
      %39 = vector.load %arg6[%c0_31, %c0_32] : memref<1x32xf32, #tpu.memory_space<vmem>>, vector<1x32xf32>
      %40 = vector.broadcast %39 : vector<1x32xf32> to vector<2x32xf32>
      %41 = arith.addf %38, %40 : vector<2x32xf32>
      %c0_33 = arith.constant 0 : index
      %c0_34 = arith.constant 0 : index
      %42 = vector.load %arg18[%c0_33, %c0_34] : memref<2x32xf32, #tpu.memory_space<vmem>>, vector<2x32xf32>
      tpu.vector_store %arg18[%c0_33, %c0_34], %41 {strides = array<i32>} : memref<2x32xf32, #tpu.memory_space<vmem>>, vector<2x32xf32>,
    } else {
    }
    %c0 = arith.constant 0 : index
    %c0_1 = arith.constant 0 : index
    %c0_2 = arith.constant 0 : index
    %3 = vector.load %arg1[%c0, %c0_1, %c0_2] : memref<2x16x4xf32, #tpu.memory_space<vmem>>, vector<2x16x4xf32>
    %4 = vector.shape_cast %3 : vector<2x16x4xf32> to vector<32x4xf32>
    %c0_3 = arith.constant 0 : index
    %c0_4 = arith.constant 0 : index
    %5 = vector.load %arg4[%c0_3, %c0_4] : memref<4x32xf32, #tpu.memory_space<vmem>>, vector<4x32xf32>
    %cst = arith.constant dense<0.000000e+00> : vector<32x32xf32>
    %6 = tpu.matmul %4, %5, %cst {dimension_numbers = #tpu.dot_dimension_numbers<[1], [0], [0], [1], [0, 0, 1, 1], [], []>} : vector<32x4xf32>, vector<4x32xf32>, vector<32x32xf32> -> vector<32x32xf32>
    %7 = vector.shape_cast %6 : vector<32x32xf32> to vector<2x16x32xf32>
    %c0_5 = arith.constant 0 : index
    %c0_6 = arith.constant 0 : index
    %8 = vector.load %arg18[%c0_5, %c0_6] : memref<2x32xf32, #tpu.memory_space<vmem>>, vector<2x32xf32>
    %9 = vector.shape_cast %8 : vector<2x32xf32> to vector<2x1x32xf32>
    %10 = vector.broadcast %9 : vector<2x1x32xf32> to vector<2x16x32xf32>
    %11 = arith.addf %7, %10 : vector<2x16x32xf32>
    %cst_7 = arith.constant 0.000000e+00 : f32
    %12 = vector.broadcast %cst_7 : f32 to vector<2x16x32xf32>
    %13 = arith.maximumf %11, %12 : vector<2x16x32xf32>
    %14 = vector.shape_cast %13 : vector<2x16x32xf32> to vector<32x32xf32>
    %c0_8 = arith.constant 0 : index
    %c0_9 = arith.constant 0 : index
    %15 = vector.load %arg7[%c0_8, %c0_9] : memref<32x32xf32, #tpu.memory_space<vmem>>, vector<32x32xf32>
    %cst_10 = arith.constant dense<0.000000e+00> : vector<32x32xf32>
    %16 = tpu.matmul %14, %15, %cst_10 {dimension_numbers = #tpu.dot_dimension_numbers<[1], [0], [0], [1], [0, 0, 1, 1], [], []>} : vector<32x32xf32>, vector<32x32xf32>, vector<32x32xf32> -> vector<32x32xf32>
    %c0_11 = arith.constant 0 : index
    %c0_12 = arith.constant 0 : index
    %17 = vector.load %arg8[%c0_11, %c0_12] : memref<1x32xf32, #tpu.memory_space<vmem>>, vector<1x32xf32>
    %18 = vector.broadcast %17 : vector<1x32xf32> to vector<32x32xf32>
    %19 = arith.addf %16, %18 : vector<32x32xf32>
    %cst_13 = arith.constant 0.000000e+00 : f32
    %20 = vector.broadcast %cst_13 : f32 to vector<32x32xf32>
    %21 = arith.maximumf %19, %20 : vector<32x32xf32>
    %22 = vector.shape_cast %21 : vector<32x32xf32> to vector<2x16x32xf32>
    %c0_14 = arith.constant 0 : index
    %c0_15 = arith.constant 0 : index
    %23 = vector.load %arg3[%c0_14, %c0_15] : memref<16x1xf32, #tpu.memory_space<vmem>>, vector<16x1xf32>
    %c0_16 = arith.constant 0 : index
    %c0_17 = arith.constant 0 : index
    %24 = vector.load %arg17[%c0_16, %c0_17] : memref<2x32xf32, #tpu.memory_space<vmem>>, vector<2x32xf32>
    %25 = vector.shape_cast %23 : vector<16x1xf32> to vector<1x16x1xf32>
    %26 = vector.broadcast %25 : vector<1x16x1xf32> to vector<2x16x32xf32>
    %27 = arith.mulf %22, %26 : vector<2x16x32xf32>
    %cst_18 = arith.constant dense<0.000000e+00> : vector<2x32xf32>
    %28 = vector.multi_reduction <add>, %27, %cst_18 [1] : vector<2x16x32xf32> to vector<2x32xf32>
    %29 = arith.addf %24, %28 : vector<2x32xf32>
    %c0_19 = arith.constant 0 : index
    %c0_20 = arith.constant 0 : index
    %30 = vector.load %arg17[%c0_19, %c0_20] : memref<2x32xf32, #tpu.memory_space<vmem>>, vector<2x32xf32>
    tpu.vector_store %arg17[%c0_19, %c0_20], %29 {strides = array<i32>} : memref<2x32xf32, #tpu.memory_space<vmem>>, vector<2x32xf32>,
    %c0_i32_21 = arith.constant 0 : i32
    %31 = arith.cmpi eq, %arg0, %c0_i32_21 : i32
    %32 = arith.extui %31 : i1 to i32
    %c0_i32_22 = arith.constant 0 : i32
    %33 = arith.cmpi ne, %32, %c0_i32_22 : i32
    scf.if %33 {
      %c0_23 = arith.constant 0 : index
      %c0_24 = arith.constant 0 : index
      %34 = vector.load %arg17[%c0_23, %c0_24] : memref<2x32xf32, #tpu.memory_space<vmem>>, vector<2x32xf32>
      %c0_25 = arith.constant 0 : index
      %c0_26 = arith.constant 0 : index
      %35 = vector.load %arg9[%c0_25, %c0_26] : memref<32x32xf32, #tpu.memory_space<vmem>>, vector<32x32xf32>
      %cst_27 = arith.constant dense<0.000000e+00> : vector<2x32xf32>
      %36 = tpu.matmul %34, %35, %cst_27 {dimension_numbers = #tpu.dot_dimension_numbers<[1], [0], [0], [1], [0, 0, 1, 1], [], []>} : vector<2x32xf32>, vector<32x32xf32>, vector<2x32xf32> -> vector<2x32xf32>
      %c0_28 = arith.constant 0 : index
      %c0_29 = arith.constant 0 : index
      %37 = vector.load %arg10[%c0_28, %c0_29] : memref<1x32xf32, #tpu.memory_space<vmem>>, vector<1x32xf32>
      %38 = vector.broadcast %37 : vector<1x32xf32> to vector<2x32xf32>
      %39 = arith.addf %36, %38 : vector<2x32xf32>
      %cst_30 = arith.constant 0.000000e+00 : f32
      %40 = vector.broadcast %cst_30 : f32 to vector<2x32xf32>
      %41 = arith.maximumf %39, %40 : vector<2x32xf32>
      %c0_31 = arith.constant 0 : index
      %c0_32 = arith.constant 0 : index
      %42 = vector.load %arg11[%c0_31, %c0_32] : memref<32x32xf32, #tpu.memory_space<vmem>>, vector<32x32xf32>
      %cst_33 = arith.constant dense<0.000000e+00> : vector<2x32xf32>
      %43 = tpu.matmul %41, %42, %cst_33 {dimension_numbers = #tpu.dot_dimension_numbers<[1], [0], [0], [1], [0, 0, 1, 1], [], []>} : vector<2x32xf32>, vector<32x32xf32>, vector<2x32xf32> -> vector<2x32xf32>
      %c0_34 = arith.constant 0 : index
      %c0_35 = arith.constant 0 : index
      %44 = vector.load %arg12[%c0_34, %c0_35] : memref<1x32xf32, #tpu.memory_space<vmem>>, vector<1x32xf32>
      %45 = vector.broadcast %44 : vector<1x32xf32> to vector<2x32xf32>
      %46 = arith.addf %43, %45 : vector<2x32xf32>
      %cst_36 = arith.constant 0.000000e+00 : f32
      %47 = vector.broadcast %cst_36 : f32 to vector<2x32xf32>
      %48 = arith.maximumf %46, %47 : vector<2x32xf32>
      %c0_37 = arith.constant 0 : index
      %c0_38 = arith.constant 0 : index
      %49 = vector.load %arg2[%c0_37, %c0_38] : memref<2x4xf32, #tpu.memory_space<vmem>>, vector<2x4xf32>
      %c0_39 = arith.constant 0 : index
      %c0_40 = arith.constant 0 : index
      %50 = vector.load %arg13[%c0_39, %c0_40] : memref<4x4xf32, #tpu.memory_space<vmem>>, vector<4x4xf32>
      %cst_41 = arith.constant dense<0.000000e+00> : vector<2x4xf32>
      %51 = tpu.matmul %49, %50, %cst_41 {dimension_numbers = #tpu.dot_dimension_numbers<[1], [0], [0], [1], [0, 0, 1, 1], [], []>} : vector<2x4xf32>, vector<4x4xf32>, vector<2x4xf32> -> vector<2x4xf32>
      %c0_42 = arith.constant 0 : index
      %c0_43 = arith.constant 0 : index
      %52 = vector.load %arg14[%c0_42, %c0_43] : memref<32x4xf32, #tpu.memory_space<vmem>>, vector<32x4xf32>
      %cst_44 = arith.constant dense<0.000000e+00> : vector<2x4xf32>
      %53 = tpu.matmul %48, %52, %cst_44 {dimension_numbers = #tpu.dot_dimension_numbers<[1], [0], [0], [1], [0, 0, 1, 1], [], []>} : vector<2x32xf32>, vector<32x4xf32>, vector<2x4xf32> -> vector<2x4xf32>
      %54 = arith.addf %51, %53 : vector<2x4xf32>
      %c0_45 = arith.constant 0 : index
      %c0_46 = arith.constant 0 : index
      %55 = vector.load %arg15[%c0_45, %c0_46] : memref<1x4xf32, #tpu.memory_space<vmem>>, vector<1x4xf32>
      %56 = vector.broadcast %55 : vector<1x4xf32> to vector<2x4xf32>
      %57 = arith.addf %54, %56 : vector<2x4xf32>
      %cst_47 = arith.constant dense<0xFF800000> : vector<2xf32>
      %58 = vector.multi_reduction <maximumf>, %57, %cst_47 [1] : vector<2x4xf32> to vector<2xf32>
      %59 = vector.shape_cast %58 : vector<2xf32> to vector<2x1xf32>
      %60 = vector.broadcast %59 : vector<2x1xf32> to vector<2x4xf32>
      %61 = arith.subf %57, %60 : vector<2x4xf32>
      %62 = math.exp %61 : vector<2x4xf32>
      %cst_48 = arith.constant dense<0.000000e+00> : vector<2xf32>
      %63 = vector.multi_reduction <add>, %62, %cst_48 [1] : vector<2x4xf32> to vector<2xf32>
      %64 = vector.shape_cast %63 : vector<2xf32> to vector<2x1xf32>
      %65 = math.log %64 : vector<2x1xf32>
      %66 = arith.addf %65, %59 : vector<2x1xf32>
      %67 = vector.broadcast %66 : vector<2x1xf32> to vector<2x4xf32>
      %68 = arith.subf %57, %67 : vector<2x4xf32>
      %c0_49 = arith.constant 0 : index
      %c0_50 = arith.constant 0 : index
      %69 = vector.load %arg16[%c0_49, %c0_50] : memref<2x4xf32, #tpu.memory_space<vmem>>, vector<2x4xf32>
      tpu.vector_store %arg16[%c0_49, %c0_50], %68 {strides = array<i32>} : memref<2x4xf32, #tpu.memory_space<vmem>>, vector<2x4xf32>,
    } else {
    }
    return
  }
  func.func @transform_0(%arg0: i32) -> (i32, i32, i32) {
    %c0_i32 = arith.constant 0 : i32
    %c0_i32_0 = arith.constant 0 : i32
    %c0_i32_1 = arith.constant 0 : i32
    return %c0_i32, %arg0, %c0_i32_0 : i32, i32, i32
  }
  func.func @transform_1(%arg0: i32) -> (i32, i32) {
    %c0_i32 = arith.constant 0 : i32
    %c0_i32_0 = arith.constant 0 : i32
    %c0_i32_1 = arith.constant 0 : i32
    return %c0_i32, %c0_i32_0 : i32, i32
  }
  func.func @transform_2(%arg0: i32) -> (i32, i32) {
    %c0_i32 = arith.constant 0 : i32
    %c0_i32_0 = arith.constant 0 : i32
    return %arg0, %c0_i32 : i32, i32
  }
  func.func @transform_3(%arg0: i32) -> (i32, i32) {
    %c0_i32 = arith.constant 0 : i32
    %c0_i32_0 = arith.constant 0 : i32
    %c0_i32_1 = arith.constant 0 : i32
    return %c0_i32, %c0_i32_0 : i32, i32
  }
  func.func @transform_4(%arg0: i32) -> (i32, i32) {
    %c0_i32 = arith.constant 0 : i32
    %c0_i32_0 = arith.constant 0 : i32
    %c0_i32_1 = arith.constant 0 : i32
    return %c0_i32, %c0_i32_0 : i32, i32
  }
  func.func @transform_5(%arg0: i32) -> (i32, i32) {
    %c0_i32 = arith.constant 0 : i32
    %c0_i32_0 = arith.constant 0 : i32
    %c0_i32_1 = arith.constant 0 : i32
    return %c0_i32, %c0_i32_0 : i32, i32
  }
  func.func @transform_6(%arg0: i32) -> (i32, i32) {
    %c0_i32 = arith.constant 0 : i32
    %c0_i32_0 = arith.constant 0 : i32
    %c0_i32_1 = arith.constant 0 : i32
    return %c0_i32, %c0_i32_0 : i32, i32
  }
  func.func @transform_7(%arg0: i32) -> (i32, i32) {
    %c0_i32 = arith.constant 0 : i32
    %c0_i32_0 = arith.constant 0 : i32
    %c0_i32_1 = arith.constant 0 : i32
    return %c0_i32, %c0_i32_0 : i32, i32
  }
  func.func @transform_8(%arg0: i32) -> (i32, i32) {
    %c0_i32 = arith.constant 0 : i32
    %c0_i32_0 = arith.constant 0 : i32
    %c0_i32_1 = arith.constant 0 : i32
    return %c0_i32, %c0_i32_0 : i32, i32
  }
  func.func @transform_9(%arg0: i32) -> (i32, i32) {
    %c0_i32 = arith.constant 0 : i32
    %c0_i32_0 = arith.constant 0 : i32
    %c0_i32_1 = arith.constant 0 : i32
    return %c0_i32, %c0_i32_0 : i32, i32
  }
  func.func @transform_10(%arg0: i32) -> (i32, i32) {
    %c0_i32 = arith.constant 0 : i32
    %c0_i32_0 = arith.constant 0 : i32
    %c0_i32_1 = arith.constant 0 : i32
    return %c0_i32, %c0_i32_0 : i32, i32
  }
  func.func @transform_11(%arg0: i32) -> (i32, i32) {
    %c0_i32 = arith.constant 0 : i32
    %c0_i32_0 = arith.constant 0 : i32
    %c0_i32_1 = arith.constant 0 : i32
    return %c0_i32, %c0_i32_0 : i32, i32
  }
  func.func @transform_12(%arg0: i32) -> (i32, i32) {
    %c0_i32 = arith.constant 0 : i32
    %c0_i32_0 = arith.constant 0 : i32
    %c0_i32_1 = arith.constant 0 : i32
    return %c0_i32, %c0_i32_0 : i32, i32
  }
  func.func @transform_13(%arg0: i32) -> (i32, i32) {
    %c0_i32 = arith.constant 0 : i32
    %c0_i32_0 = arith.constant 0 : i32
    %c0_i32_1 = arith.constant 0 : i32
    return %c0_i32, %c0_i32_0 : i32, i32
  }
  func.func @transform_14(%arg0: i32) -> (i32, i32) {
    %c0_i32 = arith.constant 0 : i32
    %c0_i32_0 = arith.constant 0 : i32
    %c0_i32_1 = arith.constant 0 : i32
    return %c0_i32, %c0_i32_0 : i32, i32
  }
  func.func @transform_15(%arg0: i32) -> (i32, i32) {
    %c0_i32 = arith.constant 0 : i32
    %c0_i32_0 = arith.constant 0 : i32
    %c0_i32_1 = arith.constant 0 : i32
    return %c0_i32, %c0_i32_0 : i32, i32
  }
}

</mosaic_0001>

<bundles_post_ra>
// kernel: tpu_custom_call.1
= control target key start
LH: loop header
LB: loop body
LE: loop exit
PB: predicated region body
PF: predicated region fallthrough
CT: control target
= control target key end

     0   :  { %20 = vsyncpa [#allocation5], 0  ;;  %s1344_s0 = inlined_call_operand.vmem [shape: f32[2,16,4], index: 0, kind: input, shape index: {}]   ;;  %s1345_s1 = inlined_call_operand.hbm [shape: f32[2,4], index: 1, kind: input, shape index: {}]   ;;  %s1346_s2 = inlined_call_operand.vmem [shape: f32[16,1], index: 2, kind: input, shape index: {}]   ;;  %s1347_s3 = inlined_call_operand.hbm [shape: f32[4,32], index: 3, kind: input, shape index: {}]   ;;  %s1348_s4 = inlined_call_operand.hbm [shape: f32[4,32], index: 4, kind: input, shape index: {}]   ;;  %s1349_s5 = inlined_call_operand.vmem [shape: f32[1,32], index: 5, kind: input, shape index: {}]   ;;  %s1350_s6 = inlined_call_operand.vmem [shape: f32[32,32], index: 6, kind: input, shape index: {}]   ;;  %s1351_s7 = inlined_call_operand.hbm [shape: f32[1,32], index: 7, kind: input, shape index: {}]   ;;  %s1352_s8 = inlined_call_operand.vmem [shape: f32[32,32], index: 8, kind: input, shape index: {}]   ;;  %s1353_s9 = inlined_call_operand.vmem [shape: f32[1,32], index: 9, kind: input, shape index: {}]   ;;  %s1354_s10 = inlined_call_operand.vmem [shape: f32[32,32], index: 10, kind: input, shape index: {}]   ;;  %s1355_s11 = inlined_call_operand.vmem [shape: f32[1,32], index: 11, kind: input, shape index: {}]   ;;  %s1356_s12 = inlined_call_operand.vmem [shape: f32[4,4], index: 12, kind: input, shape index: {}]   ;;  %s1357_s13 = inlined_call_operand.vmem [shape: f32[32,4], index: 13, kind: input, shape index: {}]   ;;  %s1358_s14 = inlined_call_operand.vmem [shape: f32[1,4], index: 14, kind: input, shape index: {}]   ;;  %s1359_s15 = inlined_call_operand.hbm [shape: f32[2,4], index: 15, kind: output, shape index: {}]  }
   0x1   :  { %21 = vsyncpa [#allocation8], 0 }
   0x2   :  { %22 = vsyncpa [#allocation11], 0 }
   0x3   :  { %23 = vsyncpa [#allocation6], 0  ;;  %s1107_s18 = smov [#allocation7]   ;;  %s1108_s20 = smov [#allocation4]  }
   0x4   :  { %s44_s19 = sshll.u32 %s1107_s18, 4  ;;  %s32_s21 = sshll.u32 %s1108_s20, 4  ;;  %s45_s19 = int_to_ptr.vmem [resolvable:$true] %s44_s19  ;;  %s33_s21 = int_to_ptr.vmem [resolvable:$true] %s32_s21 }
   0x5   :  { %s1007_s22 = scalar_lea.vmem %s45_s19, 64  ;;  %p1012_p1 = scmp.lt.s32.totalorder %s45_s19, %s45_s19 }
   0x6   :  { %p1008_p0 = scmp.ne.s32.totalorder %s45_s19, %s1007_s22  ;;  %p1013_p2 = scmp.lt.s32.totalorder %s1007_s22, %s1007_s22 }
   0x8   :  { %p1014_p3 = por %p1013_p2, %p1012_p1 }
   0xa   :  { %p1015_p4 = pnand %p1014_p3, %p1008_p0 }
   0xc   :  { %1018 = shalt.err (!%p1015_p4)
}
   0xd   :  { %47 = dma.hbm_to_vmem [thread:$0]  %s1347_s3, 64, %s45_s19, [#allocation8]  }
   0xe   :  { %s1027_s25 = scalar_lea.vmem %s33_s21, 32  ;;  %p1032_p6 = scmp.lt.s32.totalorder %s33_s21, %s33_s21 }
   0xf   :  { %p1028_p5 = scmp.ne.s32.totalorder %s33_s21, %s1027_s25  ;;  %p1033_p7 = scmp.lt.s32.totalorder %s1027_s25, %s1027_s25 }
  0x11   :  { %p1034_p8 = por %p1033_p7, %p1032_p6 }
  0x13   :  { %p1035_p9 = pnand %p1034_p8, %p1028_p5 }
  0x15   :  { %1038 = shalt.err (!%p1035_p9)
}
  0x16   :  { %35 = dma.hbm_to_vmem [thread:$0]  %s1345_s1, 32, %s33_s21, [#allocation5]  }
  0x17   :  { %s1109_s28 = smov [#allocation9]   ;;  %s1110_s30 = smov [#allocation10]  }
  0x18   :  { %s54_s29 = sshll.u32 %s1109_s28, 4  ;;  %s68_s16 = sshll.u32 %s1110_s30, 4  ;;  %s55_s29 = int_to_ptr.vmem [resolvable:$true] %s54_s29  ;;  %s69_s16 = int_to_ptr.vmem [resolvable:$true] %s68_s16 }
  0x19   :  { %s1047_s17 = scalar_lea.vmem %s55_s29, 64  ;;  %p1052_p11 = scmp.lt.s32.totalorder %s55_s29, %s55_s29 }
  0x1a   :  { %p1048_p10 = scmp.ne.s32.totalorder %s55_s29, %s1047_s17  ;;  %p1053_p12 = scmp.lt.s32.totalorder %s1047_s17, %s1047_s17 }
  0x1c   :  { %p1054_p13 = por %p1053_p12, %p1052_p11 }
  0x1e   :  { %p1055_p0 = pnand %p1054_p13, %p1048_p10 }
  0x20   :  { %1058 = shalt.err (!%p1055_p0)
}
  0x21   :  { %57 = dma.hbm_to_vmem [thread:$0]  %s1348_s4, 64, %s55_s29, [#allocation8]  }
  0x22   :  { %s1067_s19 = scalar_lea.vmem %s69_s16, 16  ;;  %s1071_s1 = scalar_lea.vmem %s69_s16, 32 }
  0x23   :  { %p1068_p1 = scmp.ne.s32.totalorder %s69_s16, %s1067_s19  ;;  %p1072_p2 = scmp.lt.s32.totalorder %s69_s16, %s69_s16 }
  0x24   :  { %p1073_p3 = scmp.lt.s32.totalorder %s1071_s1, %s1067_s19 }
  0x26   :  { %p1074_p4 = por %p1073_p3, %p1072_p2 }
  0x28   :  { %p1075_p5 = pnand %p1074_p4, %p1068_p1 }
  0x2a   :  { %1078 = shalt.err (!%p1075_p5)
}
  0x2b   :  { %71 = dma.hbm_to_vmem [thread:$0]  %s1351_s7, 16, %s69_s16, [#allocation11]  }
  0x2c   :  { %1099 = dma.done.wait [#allocation5], 32  }
  0x2d   :  { %1100 = vsyncadd [#allocation5], 4294967264 }
  0x2e   :  { %1101 = dma.done.wait [#allocation8], 128  }
  0x2f   :  { %1102 = vsyncadd [#allocation8], 4294967168 }
  0x30   :  { %1103 = dma.done.wait [#allocation11], 16  }
  0x31   :  { %1104 = vsyncadd [#allocation11], 4294967280  ;;  %v1111_v0 = vmov 0.0   ;;  %vm1112_vm0 = vmmov 0   ;;  %vm102_vm1 = vcmask 254976   ;;  %vm117_vm2 = vcmask 1043456  }
  0x32   :  { %920 = vmatprep.subr.mxu0 %v1111_v0  ;;  %922 = vmatprep.mubr.msk.f32.mxu0 %vm1112_vm0, %v1111_v0  ;;  %103 = vst.msk [vmem:[#allocation2] sm:$0x3] %vm102_vm1, %v1111_v0  ;;  %vm113_vm3 = vcmask 31744   ;;  %v105_v1 = vld [vmem:[#allocation9] sm:$0xf]  ;;  %v192_v4 = vld [vmem:[%s1344_s0] sm:$0xff]  ;;  %v312_v18 = vlaneseq }
  0x33   :  { %v104_v2 = vld [vmem:[#allocation4] sm:$0x3]  ;;  %v196_v3 = vld [vmem:[#allocation7] sm:$0xf]  ;;  %921 = vmatpush3.msk.msra.mxu0 %vm117_vm2, %v105_v1  ;;  %v194_v6 = vld [vmem:[%s1344_s0 + $0x10] sm:$0xff]  ;;  %927 = vmatprep.mubr.msk.f32.mxu1 %vm113_vm3, %v192_v4  ;;  %v1113_v13 = vmov 0  }
  0x34   :  { %925 = vmatprep.subr.msk.mxu1 %vm117_vm2, %v196_v3  ;;  %v193_v5 = vld [vmem:[%s1344_s0 + $0x8] sm:$0xff]  ;;  %923 = vmatmul.mubr.msk.f32.vlgmr.msra.gmra.mxu0 %vm113_vm3, %v104_v2  ;;  %v195_v7 = vld [vmem:[%s1344_s0 + $0x18] sm:$0xff]  ;;  %v343_v9 = vld [vmem:[%s1350_s6 + $0x10] sm:$0xff]  ;;  %v1114_v16 = vmov 1966171168   ;;  %v313_v24 = vshrl.u32 %v312_v18, 7 }
  0x35   :  { %926 = vmatpush3.msk.msra.mxu1 %vm117_vm2, %v196_v3  ;;  %v344_v8 = vld [vmem:[%s1350_s6 + $0x18] sm:$0xff]  ;;  %v342_v10 = vld [vmem:[%s1350_s6 + $0x8] sm:$0xff]  ;;  %v341_v11 = vld [vmem:[%s1350_s6] sm:$0xff]  ;;  %994 = vset.pattern.permute.xlu0 %v1113_v13  ;;  %v310_v17 = vunpack.c.l.s4 %v1114_v16  ;;  %vm352_vm4 = vcmask 261120   ;;  %vm491_vm5 = vcmask 1041409   ;;  %vm834_vm6 = vcmask 25600  }
  0x36   :  { %947 = vmatprep.subr.mxu1 %v1111_v0  ;;  %928 = vmatmul.mubr.msk.f32.vlgmr.msra.gmra.mxu1 %vm113_vm3, %v193_v5  ;;  %v454_v12 = vld [vmem:[%s1346_s2] sm:$0xff]  ;;  %v455_v14 = vld [vmem:[%s1346_s2 + $0x8] sm:$0xff]  ;;  %v325_v27 = vsub.s32 0, %v313_v24  ;;  %v504_v44 = vld [vmem:[%s1352_s8 + $0x18] sm:$0xff] }
  0x37   :  { %930 = vmatprep.mubr.msk.f32.mxu1 %vm113_vm3, %v194_v6  ;;  %933 = vmatprep.subr.mxu0 %v344_v8  ;;  %v866_v15 = vld [vmem:[%s1349_s5] ss:$0 sm:$0xff]  ;;  %v311_v23 = vunpack.c.0.s8 %v310_v17  ;;  %v503_v45 = vld [vmem:[%s1352_s8 + $0x10] sm:$0xff]  ;;  %v502_v46 = vld [vmem:[%s1352_s8 + $0x8] sm:$0xff] }
  0x38   :  { %934 = vmatpush3.msra.mxu0 %v344_v8  ;;  %459 = vperm.xlu0 %994, %v454_v12   ;;  %v501_v47 = vld [vmem:[%s1352_s8] sm:$0xff]  ;;  %v589_v48 = vld [vmem:[%s1354_s10 + $0x18] sm:$0xff]  ;;  %v588_v49 = vld [vmem:[%s1354_s10 + $0x10] sm:$0xff] }
  0x39   :  { %935 = vmatprep.subr.mxu0 %v343_v9  ;;  %v314_v26 = vsub.s32 %v311_v23, %v313_v24  ;;  %948 = vmatpush3.msra.mxu1 %v504_v44  ;;  %v875_v51 = vld [vmem:[#allocation10] ss:$0 sm:$0xff]  ;;  %v456_v23 = vld [vmem:[#allocation2] sm:$0x3] }
  0x3a   :  { %931 = vmatmul.mubr.msk.f32.gmra.mxu1 %vm113_vm3, %v195_v7  ;;  %936 = vmatpush3.msra.mxu0 %v343_v9 }
  0x3b   :  { %955 = vmatprep.mubr.msk.f32.mxu1 %vm1112_vm0, %v1111_v0  ;;  %937 = vmatprep.subr.mxu0 %v342_v10 }
  0x3c   :  { %938 = vmatpush3.msra.mxu0 %v342_v10  ;;  %464 = vperm.xlu0 %994, %v455_v14  }
  0x3d   :  { %939 = vmatprep.subr.mxu0 %v341_v11  ;;  %949 = vmatprep.subr.mxu1 %v1111_v0 }
  0x3e   :  { %940 = vmatpush3.msra.mxu0 %v341_v11  ;;  %950 = vmatpush3.msra.mxu1 %v503_v45 }
  0x3f   :  { %958 = vmatprep.subr.mxu0 %v1111_v0  ;;  %951 = vmatprep.subr.mxu1 %v1111_v0 }
  0x40   :  { %952 = vmatpush3.msra.mxu1 %v502_v46 }
  0x41   :  { %953 = vmatprep.subr.mxu1 %v1111_v0 }
  0x42   :  { %954 = vmatpush3.msra.mxu1 %v501_v47 }
  0x43   :  { %969 = vmatprep.subr.mxu1 %v1111_v0 }
  0xb3   :  { %v460_v50 = vpop.permute.xlu0 %459 }
  0xb7   :  { %v465_v55 = vpop.permute.xlu0 %464 }
  0xf4   :  { %v187_v19 = vpop.f32.mrf.mxu0 }
  0xf5   :  { %v188_v20 = vadd.f32 %v866_v15, %v187_v19 }
  0xf6   :  { %v924_v21 = vpop.f32.mrf.mxu0  ;;  %v929_v22 = vpop.f32.mrf.mxu1 }
  0xf7   :  { %191 = vst.msk [vmem:[#allocation3] sm:$0x3] %vm102_vm1, %v188_v20 }
  0xf8   :  { %v280_v25 = vpop.f32.mrf.mxu1 }
  0xfa   :  { %v932_v29 = vpop.f32.mrf.mxu1 }
  0xfc   :  { %v290_v34 = vpop.f32.mrf.mxu1 }
  0xfe   :  { %v874_v28 = vld.sshfl [vmem:[#allocation3] sm:$0x11 pattern:$0x75316420] }
  0xff   :  { %v315_v30 = vrot.slane %v874_v28, %v314_v26  ;;  %v308_v31 = vcombine.high %v874_v28, %v874_v28  ;;  %v587_v28 = vld [vmem:[%s1354_s10 + $0x8] sm:$0xff] }
 0x101   :  { %v326_v32 = vrot.slane %v315_v30, %v325_v27  ;;  %v322_v33 = vrot.slane %v308_v31, %v314_v26  ;;  %v676_v30 = vld [vmem:[%s1357_s13 + $0x18] sm:$0xff]  ;;  %v880_v31 = vld [vmem:[%s1353_s9] ss:$0 sm:$0xff] }
 0x103   :  { %v334_v35 = vadd.f32 %v929_v22, %v326_v32  ;;  %v333_v36 = vadd.f32 %v326_v32, %v280_v25  ;;  %v330_v37 = vrot.slane %v322_v33, %v325_v27 }
 0x105   :  { %v338_v38 = vmax.f32 %v334_v35, 0.0  ;;  %v337_v39 = vmax.f32 %v333_v36, 0.0  ;;  %v335_v40 = vadd.f32 %v330_v37, %v290_v34  ;;  %v336_v41 = vadd.f32 %v932_v29, %v330_v37  ;;  %v586_v29 = vld [vmem:[%s1354_s10] sm:$0xff]  ;;  %v675_v36 = vld [vmem:[%s1357_s13 + $0x10] sm:$0xff] }
 0x106   :  { %v672_v37 = vld [vmem:[%s1356_s12] sm:$0xf] }
 0x107   :  { %v339_v42 = vmax.f32 %v335_v40, 0.0  ;;  %941 = vmatprep.mubr.msk.f32.mxu0 %vm352_vm4, %v337_v39  ;;  %v340_v43 = vmax.f32 %v336_v41, 0.0  ;;  %v671_v39 = vld [vmem:[#allocation4] sm:$0x3]  ;;  %v882_v41 = vld [vmem:[%s1355_s11] ss:$0 sm:$0xff] }
 0x108   :  { %942 = vmatmul.mubr.msk.f32.vlgmr.msra.gmra.mxu0 %vm352_vm4, %v338_v38  ;;  %v674_v38 = vld [vmem:[%s1357_s13 + $0x8] sm:$0xff]  ;;  %v673_v40 = vld [vmem:[%s1357_s13] sm:$0xff]  ;;  %s1115_s11 = smov [#allocation12]  }
 0x109   :  { %944 = vmatprep.mubr.msk.f32.mxu0 %vm352_vm4, %v339_v42  ;;  %959 = vmatpush3.msra.mxu0 %v589_v48  ;;  %v887_v48 = vld [vmem:[%s1358_s14] ss:$0 sm:$0xff]  ;;  %s855_s13 = sshll.u32 %s1115_s11, 4  ;;  %s856_s13 = int_to_ptr.vmem [resolvable:$true] %s855_s13 }
 0x10a   :  { %960 = vmatprep.subr.mxu0 %v1111_v0  ;;  %s1079_s14 = scalar_lea.vmem %s856_s13, 32  ;;  %p1084_p7 = scmp.lt.s32.totalorder %s856_s13, %s856_s13 }
 0x10b   :  { %961 = vmatpush3.msra.mxu0 %v588_v49  ;;  %p1080_p6 = scmp.ne.s32.totalorder %s856_s13, %s1079_s14  ;;  %p1085_p8 = scmp.lt.s32.totalorder %s1079_s14, %s1079_s14 }
 0x10c   :  { %945 = vmatmul.mubr.msk.f32.gmra.mxu0 %vm352_vm4, %v340_v43  ;;  %962 = vmatprep.subr.mxu0 %v1111_v0 }
 0x10d   :  { %966 = vmatprep.mubr.msk.f32.mxu0 %vm1112_vm0, %v1111_v0  ;;  %963 = vmatpush3.msra.mxu0 %v587_v28  ;;  %p1086_p9 = por %p1085_p8, %p1084_p7 }
 0x10e   :  { %964 = vmatprep.subr.mxu0 %v1111_v0 }
 0x10f   :  { %965 = vmatpush3.msra.mxu0 %v586_v29  ;;  %p1087_p10 = pnand %p1086_p9, %p1080_p6 }
 0x110   :  { %980 = vmatprep.subr.mxu0 %v1111_v0 }
 0x1c8   :  { %v943_v52 = vpop.f32.mrf.mxu0 }
 0x1c9   :  { %v437_v53 = vadd.f32 %v943_v52, %v875_v51 }
 0x1ca   :  { %v431_v54 = vpop.f32.mrf.mxu0 }
 0x1cb   :  { %v451_v56 = vmax.f32 %v437_v53, 0.0  ;;  %v432_v57 = vadd.f32 %v875_v51, %v431_v54 }
 0x1cc   :  { %v946_v58 = vpop.f32.mrf.mxu0 }
 0x1cd   :  { %v450_v59 = vmax.f32 %v432_v57, 0.0  ;;  %v468_v60 = vmul.f32 %v465_v55, %v451_v56  ;;  %v447_v61 = vadd.f32 %v946_v58, %v875_v51 }
 0x1ce   :  { %v441_v62 = vpop.f32.mrf.mxu0 }
 0x1cf   :  { %v467_v63 = vmul.f32 %v460_v50, %v450_v59  ;;  %v453_v1 = vmax.f32 %v447_v61, 0.0  ;;  %v442_v2 = vadd.f32 %v875_v51, %v441_v62  ;;  %v472_v4 = vsel %vm352_vm4, %v468_v60, 0.0 }
 0x1d1   :  { %v471_v3 = vsel %vm352_vm4, %v467_v63, 0.0  ;;  %v470_v5 = vmul.f32 %v465_v55, %v453_v1  ;;  %v452_v6 = vmax.f32 %v442_v2, 0.0 }
 0x1d2   :  { %v473_v7 = vadd.f32 %v472_v4, %v471_v3 }
 0x1d3   :  { %v469_v8 = vmul.f32 %v460_v50, %v452_v6  ;;  %v481_v10 = vsel %vm352_vm4, %v470_v5, 0.0 }
 0x1d4   :  { %v474_v9 = vrot.slane %v473_v7, 4 }
 0x1d5   :  { %v480_v11 = vsel %vm352_vm4, %v469_v8, 0.0 }
 0x1d6   :  { %v475_v12 = vadd.f32 %v474_v9, %v473_v7  ;;  %v482_v13 = vadd.f32 %v481_v10, %v480_v11 }
 0x1d8   :  { %v476_v14 = vrot.slane %v475_v12, 2  ;;  %v483_v15 = vrot.slane %v482_v13, 4 }
 0x1da   :  { %v477_v16 = vadd.f32 %v476_v14, %v475_v12  ;;  %v484_v17 = vadd.f32 %v483_v15, %v482_v13 }
 0x1dc   :  { %v485_v18 = vrot.slane %v484_v17, 2  ;;  %v478_v19 = vrot.slane %v477_v16, 1 }
 0x1de   :  { %v486_v20 = vadd.f32 %v485_v18, %v484_v17  ;;  %v479_v22 = vadd.f32 %v478_v19, %v477_v16 }
 0x1e0   :  { %v487_v21 = vrot.slane %v486_v20, 1 }
 0x1e2   :  { %v488_v24 = vadd.f32 %v487_v21, %v486_v20 }
 0x1e4   :  { %v492_v25 = vsel %vm491_vm5, %v488_v24, %v479_v22 }
 0x1e5   :  { %v494_v26 = vadd.f32 %v492_v25, %v456_v23 }
 0x1e7   :  { %496 = vst.msk [vmem:[#allocation2] sm:$0x3] %vm102_vm1, %v494_v26 }
 0x1ee   :  { %v500_v27 = vld [vmem:[#allocation2] sm:$0x3] }
 0x1ef   :  { %956 = vmatmul.mubr.msk.f32.vlgmr.msra.gmra.mxu1 %vm352_vm4, %v500_v27 }
 0x1f0   :  { %977 = vmatprep.mubr.msk.f32.mxu1 %vm1112_vm0, %v1111_v0  ;;  %970 = vmatpush3.msra.mxu1 %v676_v30 }
 0x1f1   :  { %971 = vmatprep.subr.mxu1 %v1111_v0 }
 0x1f2   :  { %972 = vmatpush3.msra.mxu1 %v675_v36 }
 0x1f3   :  { %973 = vmatprep.subr.mxu1 %v1111_v0 }
 0x1f4   :  { %974 = vmatpush3.msra.mxu1 %v674_v38 }
 0x1f5   :  { %975 = vmatprep.subr.mxu1 %v1111_v0 }
 0x1f6   :  { %976 = vmatpush3.msra.mxu1 %v673_v40 }
 0x2af   :  { %v581_v32 = vpop.f32.mrf.mxu1 }
 0x2b0   :  { %v582_v33 = vadd.f32 %v880_v31, %v581_v32 }
 0x2b1   :  { %v957_v34 = vpop.f32.mrf.mxu1 }
 0x2b2   :  { %v585_v35 = vmax.f32 %v582_v33, 0.0 }
 0x2b4   :  { %967 = vmatmul.mubr.msk.f32.vlgmr.msra.gmra.mxu0 %vm352_vm4, %v585_v35 }
 0x2b5   :  { %982 = vmatprep.mubr.msk.f32.mxu0 %vm1112_vm0, %v1111_v0  ;;  %981 = vmatpush3.msk.msra.mxu0 %vm117_vm2, %v672_v37 }
 0x2b8   :  { %983 = vmatmul.mubr.msk.f32.vlgmr.msra.gmra.mxu0 %vm113_vm3, %v671_v39 }
 0x374   :  { %v666_v42 = vpop.f32.mrf.mxu0 }
 0x375   :  { %v667_v43 = vadd.f32 %v882_v41, %v666_v42 }
 0x376   :  { %v968_v44 = vpop.f32.mrf.mxu0 }
 0x377   :  { %v670_v45 = vmax.f32 %v667_v43, 0.0 }
 0x378   :  { %v822_v46 = vpop.f32.mrf.mxu0 }
 0x379   :  { %978 = vmatmul.mubr.msk.f32.vlgmr.msra.gmra.mxu1 %vm352_vm4, %v670_v45 }
 0x37a   :  { %v984_v47 = vpop.f32.mrf.mxu0 }
 0x439   :  { %v746_v0 = vpop.f32.mrf.mxu1 }
 0x43a   :  { %v823_v49 = vadd.f32 %v822_v46, %v746_v0 }
 0x43b   :  { %v979_v50 = vpop.f32.mrf.mxu1 }
 0x43c   :  { %v833_v51 = vadd.f32 %v887_v48, %v823_v49 }
 0x43e   :  { %v835_v52 = vsel %vm834_vm6, %v833_v51, -inf }
 0x43f   :  { %836 = vmax.xlane.f32.xlu1 %v835_v52 }
 0x4c8   :  { %v837_v53 = vpop.xlane.xlu1 %836 }
 0x4c9   :  { %v838_v54 = vsub.f32 %v833_v51, %v837_v53 }
 0x4cb   :  { %v839_v55 = vmul.f32 1.442695, %v838_v54 }
 0x4cd   :  { %995 = vpow2.f32 %v839_v55 }
 0x4da   :  { %v996_v56 = vpop.eup %995 }
 0x4db   :  { %v841_v57 = vsel %vm834_vm6, %v996_v56, 0.0 }
 0x4dc   :  { %842 = vadd.xlane.f32.xlu1 %v841_v57 }
 0x565   :  { %v843_v58 = vpop.xlane.xlu1 %842 }
 0x566   :  { %997 = vlog2.f32 %v843_v58 }
 0x573   :  { %v998_v59 = vpop.eup %997 }
 0x574   :  { %v845_v60 = vmul.f32 0.6931472, %v998_v59 }
 0x576   :  { %v846_v61 = vadd.f32 %v845_v60, %v837_v53 }
 0x578   :  { %v847_v62 = vsub.f32 %v833_v51, %v846_v61 }
 0x57a   :  { %848 = vst.msk [vmem:[#allocation12] sm:$0x3] %vm834_vm6, %v847_v62 }
 0x57b   :  { %1090 = shalt.err (!%p1087_p10)
}
 0x57c   :  { %858 = dma.vmem_to_hbm [thread:$0]  %s856_s13, 32, %s1359_s15, [#allocation6]  }
 0x57d   :  { %1105 = dma.done.wait [#allocation6], 32  }
 0x57e   :  { %1106 = vsyncadd [#allocation6], 4294967264 }
 0x57f   :  { %862 = vsyncpa [#allocation5], 1 }
 0x580   :  { %863 = vsyncpa [#allocation8], 1 }
 0x581   :  { %864 = vsyncpa [#allocation11], 1 }
 0x582   :  { %865 = vsyncpa [#allocation6], 1 }

</bundles_post_ra>
